<compile_context>
chip_gen: v6e
topology: v6e:2x2x1
jax: 0.10.0
libtpu: 0.0.40
codegen_flags: <defaults>
</compile_context>

<pallas_src>
import functools

import jax
import jax.numpy as jnp
from jax import lax
from jax.experimental import pallas as pl
from jax.experimental.pallas import tpu as pltpu


def _interp_matrix(n_in: int, n_out: int) -> jnp.ndarray:
    """Row-stochastic (n_out, n_in) matrix reproducing PyTorch bilinear
    (align_corners=False, half-pixel centers) interpolation along one axis."""
    o = jnp.arange(n_out, dtype=jnp.float32)
    src = (o + 0.5) * (n_in / n_out) - 0.5
    src = jnp.maximum(src, 0.0)                      # PyTorch clamps negatives
    lo = jnp.floor(src).astype(jnp.int32)
    lo = jnp.minimum(lo, n_in - 1)
    hi = jnp.minimum(lo + 1, n_in - 1)
    frac = src - lo.astype(jnp.float32)
    rows = jnp.arange(n_out)
    w = jnp.zeros((n_out, n_in), jnp.float32)
    w = w.at[rows, lo].add(1.0 - frac)
    w = w.at[rows, hi].add(frac)
    return w


def _pick_group(nc: int, H: int, W: int, in_isz: int, out_isz: int,
                c_isz: int, budget_bytes: int):
    """Largest divisor G of nc whose per-step VMEM footprint fits the budget."""
    Ho, Wo = 2 * H, 2 * W

    def footprint(g):
        x_blk = 2 * g * H * W * in_isz          # double-buffered input block
        o_blk = 2 * g * Ho * Wo * out_isz       # double-buffered output block
        wwt = 2 * W * Wo * c_isz                # width-pass weight (tiny)
        whb = 2 * g * Ho * H * 4                # height-pass weight (f32)
        temps = (g * H * Wo + 2 * g * Ho * Wo) * 4   # in-kernel f32 temporaries
        return x_blk + o_blk + wwt + whb + temps

    best = 1
    for g in range(1, nc + 1):
        if nc % g == 0 and footprint(g) <= budget_bytes:
            best = g
    return best, footprint(best)


def _upsample_kernel(wwt_ref, whb_ref, x_ref, o_ref, *, G, H, W):
    # wwt_ref: (W, Wo)      width-interp matrix (compute dtype), resident
    # whb_ref: (G, Ho, H)   height-interp matrix broadcast over planes, f32
    # x_ref  : (G*H, W)     G planes stacked along sublanes (natural layout)
    # o_ref  : (G*Ho, Wo)
    Ho, Wo = 2 * H, 2 * W

    x = x_ref[...].astype(wwt_ref.dtype)
    # Pass 1 (width): one plain MXU matmul covering all G planes at once.
    y = jnp.dot(x, wwt_ref[...], preferred_element_type=jnp.float32)  # (G*H, Wo)
    # Pass 2 (height): batched per-plane matmul, kept fully in f32.
    y = y.reshape(G, H, Wo)
    out = lax.dot_general(
        whb_ref[...], y,
        dimension_numbers=(((2,), (1,)), ((0,), (0,))),
        preferred_element_type=jnp.float32)                           # (G, Ho, Wo)
    o_ref[...] = out.reshape(G * Ho, Wo).astype(o_ref.dtype)


def upsample_bilinear_2x(x: jnp.ndarray) -> jnp.ndarray:
    """Equivalent of F.interpolate(x, scale_factor=2, mode='bilinear') on NCHW."""
    # TODO(synk): integer inputs would need rounding semantics; assume float.
    N, C, H, W = x.shape
    Ho, Wo = 2 * H, 2 * W
    NC = N * C

    compute_dtype = jnp.bfloat16 if x.dtype == jnp.bfloat16 else jnp.float32
    in_isz = jnp.dtype(x.dtype).itemsize
    out_isz = in_isz
    c_isz = jnp.dtype(compute_dtype).itemsize

    # Per-generation block budget (v7x: 64 MiB VMEM; v5e/v6e: 128 MiB).
    try:
        phys_vmem = int(pltpu.get_tpu_info().vmem_capacity_bytes)
    except Exception:
        phys_vmem = 64 * 1024 * 1024
    budget = max(4 * 1024 * 1024,
                 min(32 * 1024 * 1024, phys_vmem // 2 - 8 * 1024 * 1024))

    G, footprint = _pick_group(NC, H, W, in_isz, out_isz, c_isz, budget)
    NG = NC // G
    # TODO(synk): spatially tile H for planes too large to fit even with G=1.

    # Exact footprint + headroom, kept well below the v7x 64 MiB per-TC VMEM.
    vmem_limit = int(min(max(footprint + 2 * 1024 * 1024, 4 * 1024 * 1024),
                         56 * 1024 * 1024,
                         max(phys_vmem - 8 * 1024 * 1024, 8 * 1024 * 1024)))

    # Interp matrices (trace-time constants for static H/W).
    wwt = _interp_matrix(W, Wo).T.astype(compute_dtype)     # (W, Wo)
    wh = _interp_matrix(H, Ho)                               # (Ho, H), f32
    whb = jnp.broadcast_to(wh[None], (G, Ho, H))             # (G, Ho, H), f32

    # Zero-cost reshape: G planes stacked along sublanes, natural HBM layout.
    x3 = x.reshape(NG, G * H, W)

    kernel = functools.partial(_upsample_kernel, G=G, H=H, W=W)

    flops = 2 * NC * Wo * (H * W + Ho * H)
    bytes_accessed = (NC * H * W * in_isz + NC * Ho * Wo * out_isz
                      + W * Wo * c_isz + G * Ho * H * 4)

    out3 = pl.pallas_call(
        kernel,
        out_shape=jax.ShapeDtypeStruct((NG, G * Ho, Wo), x.dtype),
        grid_spec=pltpu.PrefetchScalarGridSpec(
            num_scalar_prefetch=0,
            grid=(NG,),
            in_specs=[
                pl.BlockSpec((W, Wo), lambda i: (0, 0)),            # Ww^T
                pl.BlockSpec((G, Ho, H), lambda i: (0, 0, 0)),      # Wh (batched)
                pl.BlockSpec((pl.Squeezed(), G * H, W),
                             lambda i: (i, 0, 0)),                  # G-plane slab
            ],
            out_specs=pl.BlockSpec((pl.Squeezed(), G * Ho, Wo),
                                   lambda i: (i, 0, 0)),
        ),
        compiler_params=pltpu.CompilerParams(
            dimension_semantics=("parallel",),
            vmem_limit_bytes=vmem_limit),
        cost_estimate=pl.CostEstimate(flops=flops, transcendentals=0,
                                      bytes_accessed=bytes_accessed),
    )(wwt, whb, x3)

    # Zero-cost reshape back to NCHW.
    return out3.reshape(N, C, Ho, Wo)


def _reference_upsample(x: jnp.ndarray) -> jnp.ndarray:
    """Pure-JAX gather-based reference with the same half-pixel semantics."""
    N, C, H, W = x.shape

    def axis_idx(n_in, n_out):
        o = jnp.arange(n_out, dtype=jnp.float32)
        src = jnp.maximum((o + 0.5) * (n_in / n_out) - 0.5, 0.0)
        lo = jnp.minimum(jnp.floor(src).astype(jnp.int32), n_in - 1)
        hi = jnp.minimum(lo + 1, n_in - 1)
        frac = src - lo.astype(jnp.float32)
        return lo, hi, frac

    hlo, hhi, hf = axis_idx(H, 2 * H)
    wlo, whi, wf = axis_idx(W, 2 * W)
    xf = x.astype(jnp.float32)
    rows = (xf[:, :, hlo, :] * (1.0 - hf)[None, None, :, None]
            + xf[:, :, hhi, :] * hf[None, None, :, None])
    out = (rows[:, :, :, wlo] * (1.0 - wf)[None, None, None, :]
           + rows[:, :, :, whi] * wf[None, None, None, :])
    return out.astype(x.dtype)


if __name__ == "__main__":
    key = jax.random.PRNGKey(0)
    # NCHW, matching the PyTorch module (batch=2, channels=4, spatial=16x16).
    x = jax.random.normal(key, (2, 4, 16, 16), dtype=jnp.float32)

    upsample = jax.jit(upsample_bilinear_2x)

    # float32 path
    y = jax.block_until_ready(upsample(x))
    assert y.shape == (2, 4, 32, 32), y.shape
    y_ref = _reference_upsample(x)
    assert jnp.allclose(y, y_ref, atol=2e-5, rtol=2e-5), float(
        jnp.max(jnp.abs(y - y_ref)))

    # bfloat16 path (second pass stays f32; only final-store rounding differs).
    x_bf = x.astype(jnp.bfloat16)
    y_bf = jax.block_until_ready(upsample(x_bf))
    y_bf_ref = _reference_upsample(x_bf)
    assert jnp.allclose(y_bf.astype(jnp.float32), y_bf_ref.astype(jnp.float32),
                        atol=5e-2, rtol=5e-2), float(
        jnp.max(jnp.abs(y_bf.astype(jnp.float32) - y_bf_ref.astype(jnp.float32))))

    print("KERNEL_OK")
</pallas_src>

<mosaic_0001>
module attributes {stable_mosaic.version = 11 : i64} {
  func.func private @main(%arg0: i32) attributes {dimension_semantics = [#tpu.dimension_semantics<core_parallel>], iteration_bounds = array<i64: 2>, tpu.core_type = #tpu.core_type<sc_scalar_subcore>, window_params = []} {
    return
  }
}

module attributes {stable_mosaic.version = 11 : i64} {
  func.func private @main(%arg0: i32) attributes {dimension_semantics = [#tpu.dimension_semantics<core_parallel>], iteration_bounds = array<i64: 2>, tpu.core_type = #tpu.core_type<sc_scalar_subcore>, window_params = []} {
    return
  }
}

module attributes {stable_mosaic.version = 11 : i64} {
  func.func @_upsample_kernel(%arg0: i32, %arg1: memref<16x32xf32, #tpu.memory_space<vmem>>, %arg2: memref<8x32x16xf32, #tpu.memory_space<vmem>>, %arg3: memref<1x128x16xf32, #tpu.memory_space<vmem>>, %arg4: memref<1x256x32xf32, #tpu.memory_space<vmem>>) attributes {dimension_semantics = [#tpu.dimension_semantics<parallel>], iteration_bounds = array<i64: 1>, scalar_prefetch = 0 : i64, scratch_operands = 0 : i64, tpu.core_type = #tpu.core_type<tc>, window_params = [{pipeline_mode = #tpu.pipeline_mode<synchronous>, transform_indices = @transform_0, window_bounds = array<i64: 16, 32>}, {pipeline_mode = #tpu.pipeline_mode<synchronous>, transform_indices = @transform_1, window_bounds = array<i64: 8, 32, 16>}, {transform_indices = @transform_2, window_bounds = array<i64: 1, 128, 16>}, {transform_indices = @transform_3, window_bounds = array<i64: 1, 256, 32>}]} {
    %c0 = arith.constant 0 : index
    %c0_0 = arith.constant 0 : index
    %c0_1 = arith.constant 0 : index
    %0 = vector.load %arg3[%c0, %c0_0, %c0_1] : memref<1x128x16xf32, #tpu.memory_space<vmem>>, vector<1x128x16xf32>
    %1 = vector.shape_cast %0 : vector<1x128x16xf32> to vector<128x16xf32>
    %c0_2 = arith.constant 0 : index
    %c0_3 = arith.constant 0 : index
    %2 = vector.load %arg1[%c0_2, %c0_3] : memref<16x32xf32, #tpu.memory_space<vmem>>, vector<16x32xf32>
    %cst = arith.constant dense<0.000000e+00> : vector<128x32xf32>
    %3 = tpu.matmul %1, %2, %cst {dimension_numbers = #tpu.dot_dimension_numbers<[1], [0], [0], [1], [0, 0, 1, 1], [], []>} : vector<128x16xf32>, vector<16x32xf32>, vector<128x32xf32> -> vector<128x32xf32>
    %4 = vector.shape_cast %3 : vector<128x32xf32> to vector<8x16x32xf32>
    %c0_4 = arith.constant 0 : index
    %c0_5 = arith.constant 0 : index
    %c0_6 = arith.constant 0 : index
    %5 = vector.load %arg2[%c0_4, %c0_5, %c0_6] : memref<8x32x16xf32, #tpu.memory_space<vmem>>, vector<8x32x16xf32>
    %cst_7 = arith.constant dense<0.000000e+00> : vector<8x32x32xf32>
    %6 = tpu.matmul %5, %4, %cst_7 {dimension_numbers = #tpu.dot_dimension_numbers<[2], [1], [1], [2], [0, 0, 0, 1, 1, 2], [0], [0]>} : vector<8x32x16xf32>, vector<8x16x32xf32>, vector<8x32x32xf32> -> vector<8x32x32xf32>
    %7 = vector.shape_cast %6 : vector<8x32x32xf32> to vector<256x32xf32>
    %c0_8 = arith.constant 0 : index
    %c0_9 = arith.constant 0 : index
    %c0_10 = arith.constant 0 : index
    %8 = vector.load %arg4[%c0_8, %c0_9, %c0_10] : memref<1x256x32xf32, #tpu.memory_space<vmem>>, vector<1x256x32xf32>
    %9 = vector.shape_cast %8 : vector<1x256x32xf32> to vector<256x32xf32>
    %10 = vector.shape_cast %7 : vector<256x32xf32> to vector<1x256x32xf32>
    tpu.vector_store %arg4[%c0_8, %c0_9, %c0_10], %10 {strides = array<i32>} : memref<1x256x32xf32, #tpu.memory_space<vmem>>, vector<1x256x32xf32>,
    return
  }
  func.func @transform_0(%arg0: i32) -> (i32, i32) {
    %c0_i32 = arith.constant 0 : i32
    %c0_i32_0 = arith.constant 0 : i32
    %c0_i32_1 = arith.constant 0 : i32
    return %c0_i32, %c0_i32_0 : i32, i32
  }
  func.func @transform_1(%arg0: i32) -> (i32, i32, i32) {
    %c0_i32 = arith.constant 0 : i32
    %c0_i32_0 = arith.constant 0 : i32
    %c0_i32_1 = arith.constant 0 : i32
    %c0_i32_2 = arith.constant 0 : i32
    return %c0_i32, %c0_i32_0, %c0_i32_1 : i32, i32, i32
  }
  func.func @transform_2(%arg0: i32) -> (i32, i32, i32) {
    %c0_i32 = arith.constant 0 : i32
    %c0_i32_0 = arith.constant 0 : i32
    %c0_i32_1 = arith.constant 0 : i32
    return %arg0, %c0_i32, %c0_i32_0 : i32, i32, i32
  }
  func.func @transform_3(%arg0: i32) -> (i32, i32, i32) {
    %c0_i32 = arith.constant 0 : i32
    %c0_i32_0 = arith.constant 0 : i32
    %c0_i32_1 = arith.constant 0 : i32
    return %arg0, %c0_i32, %c0_i32_0 : i32, i32, i32
  }
}

</mosaic_0001>

<bundles_post_ra>
// kernel: upsample_bilinear_2x.1
= control target key start
LH: loop header
LB: loop body
LE: loop exit
PB: predicated region body
PF: predicated region fallthrough
CT: control target
= control target key end

     0   :  { %vm33_vm0 = vcmask 130048   ;;  %s1587_s0 = inlined_call_operand.vmem [shape: f32[16,32], index: 0, kind: input, shape index: {}]   ;;  %s1588_s1 = inlined_call_operand.vmem [shape: f32[8,32,16], index: 1, kind: input, shape index: {}]   ;;  %s1589_s2 = inlined_call_operand.vmem [shape: f32[1,128,16], index: 2, kind: input, shape index: {}]   ;;  %s1590_s3 = inlined_call_operand.hbm [shape: f32[1,256,32], index: 3, kind: output, shape index: {}]  }
   0x1   :  { %v32_v0 = vld [vmem:[%s1587_s0 + $0x8] sm:$0xff]  ;;  %v31_v1 = vld [vmem:[%s1587_s0] sm:$0xff]  ;;  %v17_v4 = vld [vmem:[%s1589_s2 + $0x10] sm:$0xff] }
   0x2   :  { %v15_v2 = vld [vmem:[%s1589_s2] sm:$0xff]  ;;  %1198 = vmatprep.subr.mxu0 %v32_v0  ;;  %v16_v3 = vld [vmem:[%s1589_s2 + $0x8] sm:$0xff]  ;;  %v18_v5 = vld [vmem:[%s1589_s2 + $0x18] sm:$0xff] }
   0x3   :  { %1202 = vmatprep.mubr.msk.f32.mxu0 %vm33_vm0, %v15_v2  ;;  %1199 = vmatpush3.msra.mxu0 %v32_v0 }
   0x4   :  { %1200 = vmatprep.subr.mxu0 %v31_v1 }
   0x5   :  { %1201 = vmatpush3.msra.mxu0 %v31_v1 }
   0x6   :  { %1203 = vmatmul.mubr.msk.f32.vlgmr.msra.gmra.mxu0 %vm33_vm0, %v16_v3 }
   0x7   :  { %1205 = vmatprep.mubr.msk.f32.mxu0 %vm33_vm0, %v17_v4 }
   0x8   :  { %8 = vsyncpa [#allocation3], 0  ;;  %v19_v6 = vld [vmem:[%s1589_s2 + $0x20] sm:$0xff]  ;;  %v20_v7 = vld [vmem:[%s1589_s2 + $0x28] sm:$0xff]  ;;  %vm1035_vm1 = vcmask 261120  }
   0x9   :  { %v21_v8 = vld [vmem:[%s1589_s2 + $0x30] sm:$0xff]  ;;  %v22_v9 = vld [vmem:[%s1589_s2 + $0x38] sm:$0xff]  ;;  %v23_v10 = vld [vmem:[%s1589_s2 + $0x40] sm:$0xff] }
   0xa   :  { %1206 = vmatmul.mubr.msk.f32.gmra.mxu0 %vm33_vm0, %v18_v5  ;;  %v24_v11 = vld [vmem:[%s1589_s2 + $0x48] sm:$0xff]  ;;  %v25_v12 = vld [vmem:[%s1589_s2 + $0x50] sm:$0xff]  ;;  %v26_v13 = vld [vmem:[%s1589_s2 + $0x58] sm:$0xff] }
   0xb   :  { %1208 = vmatprep.mubr.msk.f32.mxu0 %vm33_vm0, %v19_v6  ;;  %v27_v14 = vld [vmem:[%s1589_s2 + $0x60] sm:$0xff]  ;;  %v28_v15 = vld [vmem:[%s1589_s2 + $0x68] sm:$0xff]  ;;  %v29_v16 = vld [vmem:[%s1589_s2 + $0x70] sm:$0xff] }
   0xc   :  { %v30_v17 = vld [vmem:[%s1589_s2 + $0x78] sm:$0xff]  ;;  %v227_v18 = vld [vmem:[%s1588_s1] sm:$0xff]  ;;  %v228_v22 = vld [vmem:[%s1588_s1 + $0x8] sm:$0xff] }
   0xd   :  { %1230 = vmatprep.mubr.msk.f32.mxu1 %vm33_vm0, %v227_v18  ;;  %v243_v19 = vld [vmem:[%s1588_s1 + $0x80] sm:$0xff]  ;;  %v229_v23 = vld [vmem:[%s1588_s1 + $0x10] sm:$0xff]  ;;  %v230_v26 = vld [vmem:[%s1588_s1 + $0x18] sm:$0xff] }
   0xe   :  { %1209 = vmatmul.mubr.msk.f32.gmra.mxu0 %vm33_vm0, %v20_v7  ;;  %v231_v27 = vld [vmem:[%s1588_s1 + $0x20] sm:$0xff]  ;;  %v232_v30 = vld [vmem:[%s1588_s1 + $0x28] sm:$0xff]  ;;  %v233_v31 = vld [vmem:[%s1588_s1 + $0x30] sm:$0xff] }
   0xf   :  { %1211 = vmatprep.mubr.msk.f32.mxu0 %vm33_vm0, %v21_v8  ;;  %v234_v34 = vld [vmem:[%s1588_s1 + $0x38] sm:$0xff]  ;;  %v235_v35 = vld [vmem:[%s1588_s1 + $0x40] sm:$0xff]  ;;  %v236_v38 = vld [vmem:[%s1588_s1 + $0x48] sm:$0xff] }
  0x10   :  { %v237_v39 = vld [vmem:[%s1588_s1 + $0x50] sm:$0xff]  ;;  %v244_v41 = vld [vmem:[%s1588_s1 + $0x88] sm:$0xff]  ;;  %v238_v43 = vld [vmem:[%s1588_s1 + $0x58] sm:$0xff] }
  0x11   :  { %v245_v42 = vld [vmem:[%s1588_s1 + $0x90] sm:$0xff]  ;;  %v239_v45 = vld [vmem:[%s1588_s1 + $0x60] sm:$0xff]  ;;  %v246_v47 = vld [vmem:[%s1588_s1 + $0x98] sm:$0xff] }
  0x12   :  { %1212 = vmatmul.mubr.msk.f32.gmra.mxu0 %vm33_vm0, %v22_v9  ;;  %v240_v48 = vld [vmem:[%s1588_s1 + $0x68] sm:$0xff]  ;;  %v241_v50 = vld [vmem:[%s1588_s1 + $0x70] sm:$0xff]  ;;  %v251_v51 = vld [vmem:[%s1588_s1 + $0xc0] sm:$0xff] }
  0x13   :  { %1214 = vmatprep.mubr.msk.f32.mxu0 %vm33_vm0, %v23_v10  ;;  %v252_v52 = vld [vmem:[%s1588_s1 + $0xc8] sm:$0xff]  ;;  %v242_v53 = vld [vmem:[%s1588_s1 + $0x78] sm:$0xff]  ;;  %v247_v55 = vld [vmem:[%s1588_s1 + $0xa0] sm:$0xff] }
  0x14   :  { %v253_v56 = vld [vmem:[%s1588_s1 + $0xd0] sm:$0xff]  ;;  %v254_v57 = vld [vmem:[%s1588_s1 + $0xd8] sm:$0xff]  ;;  %v248_v58 = vld [vmem:[%s1588_s1 + $0xa8] sm:$0xff] }
  0x15   :  { %v249_v59 = vld [vmem:[%s1588_s1 + $0xb0] sm:$0xff]  ;;  %v250_v61 = vld [vmem:[%s1588_s1 + $0xb8] sm:$0xff]  ;;  %v255_v62 = vld [vmem:[%s1588_s1 + $0xe0] sm:$0xff] }
  0x16   :  { %1215 = vmatmul.mubr.msk.f32.gmra.mxu0 %vm33_vm0, %v24_v11  ;;  %v256_v63 = vld [vmem:[%s1588_s1 + $0xe8] sm:$0xff]  ;;  %v257_v0 = vld [vmem:[%s1588_s1 + $0xf0] sm:$0xff]  ;;  %v258_v1 = vld [vmem:[%s1588_s1 + $0xf8] sm:$0xff]  ;;  %s1331_s1 = smov [#allocation2]  }
  0x17   :  { %1217 = vmatprep.mubr.msk.f32.mxu0 %vm33_vm0, %v25_v12  ;;  %s1073_s24 = sshll.u32 %s1331_s1, 4  ;;  %s1074_s24 = int_to_ptr.vmem [resolvable:$true] %s1073_s24 }
  0x18   :  { %s1309_s25 = scalar_lea.vmem %s1074_s24, 4096  ;;  %p1314_p1 = scmp.lt.s32.totalorder %s1074_s24, %s1074_s24 }
  0x19   :  { %p1310_p0 = scmp.ne.s32.totalorder %s1074_s24, %s1309_s25  ;;  %p1315_p2 = scmp.lt.s32.totalorder %s1309_s25, %s1309_s25 }
  0x1a   :  { %1218 = vmatmul.mubr.msk.f32.gmra.mxu0 %vm33_vm0, %v26_v13 }
  0x1b   :  { %1220 = vmatprep.mubr.msk.f32.mxu0 %vm33_vm0, %v27_v14  ;;  %p1316_p3 = por %p1315_p2, %p1314_p1 }
  0x1d   :  { %p1317_p4 = pnand %p1316_p3, %p1310_p0 }
  0x1e   :  { %1221 = vmatmul.mubr.msk.f32.gmra.mxu0 %vm33_vm0, %v28_v15 }
  0x1f   :  { %1223 = vmatprep.mubr.msk.f32.mxu0 %vm33_vm0, %v29_v16 }
  0x22   :  { %1224 = vmatmul.mubr.msk.f32.gmra.mxu0 %vm33_vm0, %v30_v17 }
  0x23   :  { %1270 = vmatprep.mubr.msk.f32.mxu0 %vm33_vm0, %v243_v19 }
  0xc6   :  { %v1204_v20 = vpop.f32.mrf.mxu0 }
  0xc7   :  { %1226 = vmatprep.subr.mxu1 %v1204_v20 }
  0xc8   :  { %v148_v21 = vpop.f32.mrf.mxu0  ;;  %1227 = vmatpush3.msra.mxu1 %v1204_v20 }
  0xc9   :  { %1228 = vmatprep.subr.mxu1 %v148_v21 }
  0xca   :  { %v1207_v24 = vpop.f32.mrf.mxu0  ;;  %1229 = vmatpush3.msra.mxu1 %v148_v21 }
  0xcb   :  { %1231 = vmatmul.mubr.msk.f32.vlgmr.msra.gmra.mxu1 %vm33_vm0, %v228_v22  ;;  %1236 = vmatprep.subr.mxu1 %v1207_v24 }
  0xcc   :  { %v158_v25 = vpop.f32.mrf.mxu0  ;;  %1237 = vmatpush3.msra.mxu1 %v1207_v24  ;;  %1233 = vmatprep.mubr.msk.f32.mxu1 %vm33_vm0, %v229_v23 }
  0xcd   :  { %1238 = vmatprep.subr.mxu1 %v158_v25 }
  0xce   :  { %v1210_v28 = vpop.f32.mrf.mxu0  ;;  %1239 = vmatpush3.msra.mxu1 %v158_v25 }
  0xcf   :  { %1234 = vmatmul.mubr.msk.f32.gmra.mxu1 %vm33_vm0, %v230_v26  ;;  %1246 = vmatprep.subr.mxu1 %v1210_v28 }
  0xd0   :  { %v168_v29 = vpop.f32.mrf.mxu0  ;;  %1240 = vmatprep.mubr.msk.f32.mxu1 %vm33_vm0, %v231_v27 }
  0xd2   :  { %v1213_v32 = vpop.f32.mrf.mxu0 }
  0xd3   :  { %1241 = vmatmul.mubr.msk.f32.vlgmr.msra.gmra.mxu1 %vm33_vm0, %v232_v30 }
  0xd4   :  { %1247 = vmatpush3.msra.mxu1 %v1210_v28  ;;  %v178_v33 = vpop.f32.mrf.mxu0  ;;  %1243 = vmatprep.mubr.msk.f32.mxu1 %vm33_vm0, %v233_v31 }
  0xd5   :  { %1248 = vmatprep.subr.mxu1 %v168_v29 }
  0xd6   :  { %1249 = vmatpush3.msra.mxu1 %v168_v29  ;;  %v1216_v36 = vpop.f32.mrf.mxu0 }
  0xd7   :  { %1256 = vmatprep.subr.mxu1 %v1213_v32  ;;  %1244 = vmatmul.mubr.msk.f32.gmra.mxu1 %vm33_vm0, %v234_v34 }
  0xd8   :  { %1266 = vmatprep.subr.mxu0 %v1216_v36  ;;  %v188_v37 = vpop.f32.mrf.mxu0  ;;  %1250 = vmatprep.mubr.msk.f32.mxu1 %vm33_vm0, %v235_v35 }
  0xd9   :  { %1267 = vmatpush3.msra.mxu0 %v1216_v36 }
  0xda   :  { %1268 = vmatprep.subr.mxu0 %v188_v37  ;;  %v1219_v40 = vpop.f32.mrf.mxu0 }
  0xdb   :  { %1269 = vmatpush3.msra.mxu0 %v188_v37  ;;  %1251 = vmatmul.mubr.msk.f32.vlgmr.msra.gmra.mxu1 %vm33_vm0, %v236_v38 }
  0xdc   :  { %1257 = vmatpush3.msra.mxu1 %v1213_v32  ;;  %1253 = vmatprep.mubr.msk.f32.mxu1 %vm33_vm0, %v237_v39  ;;  %v198_v44 = vpop.f32.mrf.mxu0 }
  0xdd   :  { %1258 = vmatprep.subr.mxu1 %v178_v33  ;;  %1271 = vmatmul.mubr.msk.f32.vlgmr.msra.gmra.mxu0 %vm33_vm0, %v244_v41 }
  0xde   :  { %1259 = vmatpush3.msra.mxu1 %v178_v33  ;;  %v1222_v46 = vpop.f32.mrf.mxu0  ;;  %1273 = vmatprep.mubr.msk.f32.mxu0 %vm33_vm0, %v245_v42 }
  0xdf   :  { %1254 = vmatmul.mubr.msk.f32.gmra.mxu1 %vm33_vm0, %v238_v43  ;;  %1276 = vmatprep.subr.mxu1 %v1219_v40 }
  0xe0   :  { %1260 = vmatprep.mubr.msk.f32.mxu1 %vm33_vm0, %v239_v45  ;;  %1286 = vmatprep.subr.mxu0 %v1222_v46  ;;  %v208_v49 = vpop.f32.mrf.mxu0 }
  0xe1   :  { %1287 = vmatpush3.msra.mxu0 %v1222_v46 }
  0xe2   :  { %1288 = vmatprep.subr.mxu0 %v208_v49  ;;  %1274 = vmatmul.mubr.msk.f32.gmra.mxu0 %vm33_vm0, %v246_v47  ;;  %v1225_v54 = vpop.f32.mrf.mxu0 }
  0xe3   :  { %1261 = vmatmul.mubr.msk.f32.vlgmr.msra.gmra.mxu1 %vm33_vm0, %v240_v48  ;;  %1289 = vmatpush3.msra.mxu0 %v208_v49 }
  0xe4   :  { %1277 = vmatpush3.msra.mxu1 %v1219_v40  ;;  %1263 = vmatprep.mubr.msk.f32.mxu1 %vm33_vm0, %v241_v50  ;;  %v218_v60 = vpop.f32.mrf.mxu0 }
  0xe5   :  { %1278 = vmatprep.subr.mxu1 %v198_v44  ;;  %1290 = vmatprep.mubr.msk.f32.mxu0 %vm33_vm0, %v251_v51 }
  0xe6   :  { %1279 = vmatpush3.msra.mxu1 %v198_v44  ;;  %1291 = vmatmul.mubr.msk.f32.vlgmr.msra.gmra.mxu0 %vm33_vm0, %v252_v52 }
  0xe7   :  { %1264 = vmatmul.mubr.msk.f32.gmra.mxu1 %vm33_vm0, %v242_v53  ;;  %1296 = vmatprep.subr.mxu1 %v1225_v54 }
  0xe8   :  { %1280 = vmatprep.mubr.msk.f32.mxu1 %vm33_vm0, %v247_v55  ;;  %1293 = vmatprep.mubr.msk.f32.mxu0 %vm33_vm0, %v253_v56 }
  0xea   :  { %1294 = vmatmul.mubr.msk.f32.gmra.mxu0 %vm33_vm0, %v254_v57 }
  0xeb   :  { %1281 = vmatmul.mubr.msk.f32.vlgmr.msra.gmra.mxu1 %vm33_vm0, %v248_v58 }
  0xec   :  { %1297 = vmatpush3.msra.mxu1 %v1225_v54  ;;  %1283 = vmatprep.mubr.msk.f32.mxu1 %vm33_vm0, %v249_v59 }
  0xed   :  { %1298 = vmatprep.subr.mxu1 %v218_v60 }
  0xee   :  { %1299 = vmatpush3.msra.mxu1 %v218_v60 }
  0xef   :  { %1284 = vmatmul.mubr.msk.f32.gmra.mxu1 %vm33_vm0, %v250_v61 }
  0xf0   :  { %1300 = vmatprep.mubr.msk.f32.mxu1 %vm33_vm0, %v255_v62 }
  0xf3   :  { %1301 = vmatmul.mubr.msk.f32.vlgmr.msra.gmra.mxu1 %vm33_vm0, %v256_v63 }
  0xf4   :  { %1303 = vmatprep.mubr.msk.f32.mxu1 %vm33_vm0, %v257_v0 }
  0xf7   :  { %1304 = vmatmul.mubr.msk.f32.gmra.mxu1 %vm33_vm0, %v258_v1 }
 0x18b   :  { %v1232_v2 = vpop.f32.mrf.mxu1 }
 0x18c   :  { %1037 = vst.msk [vmem:[#allocation2 + $0x8] sm:$0xff] %vm1035_vm1, %v1232_v2 }
 0x18d   :  { %v337_v3 = vpop.f32.mrf.mxu1 }
 0x18e   :  { %1036 = vst.msk [vmem:[#allocation2] sm:$0xff] %vm1035_vm1, %v337_v3 }
 0x18f   :  { %v1235_v4 = vpop.f32.mrf.mxu1 }
 0x190   :  { %1039 = vst.msk [vmem:[#allocation2 + $0x18] sm:$0xff] %vm1035_vm1, %v1235_v4 }
 0x191   :  { %v347_v5 = vpop.f32.mrf.mxu1 }
 0x192   :  { %1038 = vst.msk [vmem:[#allocation2 + $0x10] sm:$0xff] %vm1035_vm1, %v347_v5 }
 0x193   :  { %v1242_v6 = vpop.f32.mrf.mxu1 }
 0x194   :  { %1041 = vst.msk [vmem:[#allocation2 + $0x28] sm:$0xff] %vm1035_vm1, %v1242_v6 }
 0x195   :  { %v434_v7 = vpop.f32.mrf.mxu1 }
 0x196   :  { %1040 = vst.msk [vmem:[#allocation2 + $0x20] sm:$0xff] %vm1035_vm1, %v434_v7 }
 0x197   :  { %v1245_v8 = vpop.f32.mrf.mxu1 }
 0x198   :  { %1043 = vst.msk [vmem:[#allocation2 + $0x38] sm:$0xff] %vm1035_vm1, %v1245_v8 }
 0x199   :  { %v444_v9 = vpop.f32.mrf.mxu1 }
 0x19a   :  { %1042 = vst.msk [vmem:[#allocation2 + $0x30] sm:$0xff] %vm1035_vm1, %v444_v9 }
 0x19b   :  { %v1252_v10 = vpop.f32.mrf.mxu1 }
 0x19c   :  { %1045 = vst.msk [vmem:[#allocation2 + $0x48] sm:$0xff] %vm1035_vm1, %v1252_v10 }
 0x19d   :  { %v531_v11 = vpop.f32.mrf.mxu1  ;;  %v1272_v12 = vpop.f32.mrf.mxu0 }
 0x19e   :  { %1044 = vst.msk [vmem:[#allocation2 + $0x40] sm:$0xff] %vm1035_vm1, %v531_v11  ;;  %1053 = vst.msk [vmem:[#allocation2 + $0x88] sm:$0xff] %vm1035_vm1, %v1272_v12 }
 0x19f   :  { %v1255_v13 = vpop.f32.mrf.mxu1  ;;  %v725_v14 = vpop.f32.mrf.mxu0 }
 0x1a0   :  { %1047 = vst.msk [vmem:[#allocation2 + $0x58] sm:$0xff] %vm1035_vm1, %v1255_v13  ;;  %1052 = vst.msk [vmem:[#allocation2 + $0x80] sm:$0xff] %vm1035_vm1, %v725_v14 }
 0x1a1   :  { %v541_v15 = vpop.f32.mrf.mxu1 }
 0x1a2   :  { %1046 = vst.msk [vmem:[#allocation2 + $0x50] sm:$0xff] %vm1035_vm1, %v541_v15  ;;  %v1275_v16 = vpop.f32.mrf.mxu0 }
 0x1a3   :  { %v1262_v17 = vpop.f32.mrf.mxu1  ;;  %1055 = vst.msk [vmem:[#allocation2 + $0x98] sm:$0xff] %vm1035_vm1, %v1275_v16 }
 0x1a4   :  { %1049 = vst.msk [vmem:[#allocation2 + $0x68] sm:$0xff] %vm1035_vm1, %v1262_v17  ;;  %v735_v18 = vpop.f32.mrf.mxu0 }
 0x1a5   :  { %v628_v19 = vpop.f32.mrf.mxu1  ;;  %1054 = vst.msk [vmem:[#allocation2 + $0x90] sm:$0xff] %vm1035_vm1, %v735_v18 }
 0x1a6   :  { %1048 = vst.msk [vmem:[#allocation2 + $0x60] sm:$0xff] %vm1035_vm1, %v628_v19  ;;  %v1292_v20 = vpop.f32.mrf.mxu0 }
 0x1a7   :  { %v1265_v21 = vpop.f32.mrf.mxu1  ;;  %1061 = vst.msk [vmem:[#allocation2 + $0xc8] sm:$0xff] %vm1035_vm1, %v1292_v20 }
 0x1a8   :  { %1051 = vst.msk [vmem:[#allocation2 + $0x78] sm:$0xff] %vm1035_vm1, %v1265_v21  ;;  %v919_v22 = vpop.f32.mrf.mxu0 }
 0x1a9   :  { %v638_v23 = vpop.f32.mrf.mxu1  ;;  %1060 = vst.msk [vmem:[#allocation2 + $0xc0] sm:$0xff] %vm1035_vm1, %v919_v22 }
 0x1aa   :  { %1050 = vst.msk [vmem:[#allocation2 + $0x70] sm:$0xff] %vm1035_vm1, %v638_v23  ;;  %v1295_v24 = vpop.f32.mrf.mxu0 }
 0x1ab   :  { %v1282_v25 = vpop.f32.mrf.mxu1  ;;  %1063 = vst.msk [vmem:[#allocation2 + $0xd8] sm:$0xff] %vm1035_vm1, %v1295_v24 }
 0x1ac   :  { %1057 = vst.msk [vmem:[#allocation2 + $0xa8] sm:$0xff] %vm1035_vm1, %v1282_v25  ;;  %v929_v26 = vpop.f32.mrf.mxu0 }
 0x1ad   :  { %v822_v27 = vpop.f32.mrf.mxu1  ;;  %1062 = vst.msk [vmem:[#allocation2 + $0xd0] sm:$0xff] %vm1035_vm1, %v929_v26 }
 0x1ae   :  { %1056 = vst.msk [vmem:[#allocation2 + $0xa0] sm:$0xff] %vm1035_vm1, %v822_v27 }
 0x1af   :  { %v1285_v28 = vpop.f32.mrf.mxu1 }
 0x1b0   :  { %1059 = vst.msk [vmem:[#allocation2 + $0xb8] sm:$0xff] %vm1035_vm1, %v1285_v28 }
 0x1b1   :  { %v832_v29 = vpop.f32.mrf.mxu1 }
 0x1b2   :  { %1058 = vst.msk [vmem:[#allocation2 + $0xb0] sm:$0xff] %vm1035_vm1, %v832_v29 }
 0x1b3   :  { %v1302_v30 = vpop.f32.mrf.mxu1 }
 0x1b4   :  { %1065 = vst.msk [vmem:[#allocation2 + $0xe8] sm:$0xff] %vm1035_vm1, %v1302_v30 }
 0x1b5   :  { %v1016_v31 = vpop.f32.mrf.mxu1 }
 0x1b6   :  { %1064 = vst.msk [vmem:[#allocation2 + $0xe0] sm:$0xff] %vm1035_vm1, %v1016_v31 }
 0x1b7   :  { %v1305_v32 = vpop.f32.mrf.mxu1 }
 0x1b8   :  { %1067 = vst.msk [vmem:[#allocation2 + $0xf8] sm:$0xff] %vm1035_vm1, %v1305_v32 }
 0x1b9   :  { %v1026_v33 = vpop.f32.mrf.mxu1 }
 0x1ba   :  { %1066 = vst.msk [vmem:[#allocation2 + $0xf0] sm:$0xff] %vm1035_vm1, %v1026_v33 }
 0x1bb   :  { %1320 = shalt.err (!%p1317_p4)
}
 0x1bc   :  { %s1332_s26 = smov 128   ;;  %s1333_s27 = smov 8  }
 0x1bd   :  { %1079 = dma.vmem_to_hbm [thread:$0]  %s1074_s24, 4096, %s1590_s3, [#allocation3], %s1332_s26, %s1332_s26, %s1333_s27  }
 0x1be   :  { %1329 = dma.done.wait [#allocation3], 4096  }
 0x1bf   :  { %1330 = vsyncadd [#allocation3], 4294963200 }
 0x1c0   :  { %1083 = vsyncpa [#allocation3], 1 }

</bundles_post_ra>
